<compile_context>
chip_gen: v5e
topology: v5e:2x2
jax: 0.10.0
libtpu: 0.0.40
codegen_flags: <defaults>
</compile_context>

<pallas_src>
import functools
import math

import jax
import jax.numpy as jnp
from jax.experimental import pallas as pl
from jax.experimental.pallas import tpu as pltpu

_LANES = 128


def _cdiv(a: int, b: int) -> int:
    return -(-a // b)


def _hard_sigmoid_clip_kernel(x_ref, o_ref, *, slope, offset, compute_dtype):
    # Valid only when slope > 0 and the breakpoints coincide with the 0/1
    # crossings of x*slope+offset (checked in the wrapper).
    x = x_ref[...].astype(compute_dtype)
    o_ref[...] = jnp.clip(x * slope + offset, 0.0, 1.0).astype(o_ref.dtype)


def _hard_sigmoid_where_kernel(x_ref, o_ref, *, slope, offset, left, right,
                               compute_dtype):
    x = x_ref[...].astype(compute_dtype)
    mid = x * slope + offset
    out = jnp.where(x <= left, 0.0, jnp.where(x >= right, 1.0, mid))
    o_ref[...] = out.astype(o_ref.dtype)


def _sublane_multiple(dtype) -> int:
    # f32 -> 8 sublanes, bf16 -> 16, int8/fp8 -> 32 (packed sublane tiles).
    itemsize = jnp.dtype(dtype).itemsize
    return max(8, 32 // max(1, itemsize))


def _vpu_supports_bf16() -> bool:
    # v6e / v7x have a bf16 VPU; v5e and older do not. Conservative on error.
    try:
        kind = jax.devices()[0].device_kind.lower()
    except Exception:
        return False
    return not any(v in kind for v in ("v2", "v3", "v4", "v5"))


def _choose_row_tile(rows: int, sub: int, max_row_tile: int,
                     target_blocks: int = 8) -> int:
    """Pick a sublane-aligned row tile that yields several (ideally even) blocks."""
    max_row_tile = max(sub, (max_row_tile // sub) * sub)
    if rows <= sub:
        return rows  # one tiny block; nothing to pipeline
    rt = _cdiv(_cdiv(rows, target_blocks), sub) * sub
    rt = max(sub, min(rt, max_row_tile))
    # Nudge toward an even block count so v7x's two TensorCores both get work.
    nblk = _cdiv(rows, rt)
    if nblk > 1 and nblk % 2 == 1:
        rt_alt = max(sub, _cdiv(_cdiv(rows, nblk + 1), sub) * sub)
        if rt_alt <= max_row_tile and _cdiv(rows, rt_alt) % 2 == 0:
            rt = rt_alt
    return rt


def hard_sigmoid(x, slope=1.0 / 6.0, offset=0.5,
                 left_interval=-3.0, right_interval=3.0,
                 max_row_tile=4096):
    """Elementwise HardSigmoid. x: any shape (e.g. NCHW). Same shape/dtype out.

    Note: PyTorch's HardSigmoid is a float op; integer dtypes are accepted but
    the 0..1 float result truncates to 0/1 on the final cast.
    """
    orig_shape = x.shape
    orig_dtype = x.dtype
    n = x.size

    slope = float(slope)
    offset = float(offset)
    left = float(left_interval)
    right = float(right_interval)

    # Cheap clip form only when slope > 0 and the breakpoints match the linear
    # ramp's 0/1 crossings (defaults). Guards divide-by-zero / negative slope.
    clip_ok = (
        slope > 0.0
        and math.isclose(left, -offset / slope, rel_tol=1e-12, abs_tol=1e-12)
        and math.isclose(right, (1.0 - offset) / slope, rel_tol=1e-12, abs_tol=1e-12)
    )

    # Compute dtype: keep bf16 native on chips with a bf16 VPU; otherwise f32.
    if orig_dtype == jnp.bfloat16 and _vpu_supports_bf16():
        compute_dtype = jnp.bfloat16
    else:
        compute_dtype = jnp.float32

    if clip_ok:
        kernel = functools.partial(_hard_sigmoid_clip_kernel,
                                   slope=slope, offset=offset,
                                   compute_dtype=compute_dtype)
    else:
        kernel = functools.partial(_hard_sigmoid_where_kernel,
                                   slope=slope, offset=offset,
                                   left=left, right=right,
                                   compute_dtype=compute_dtype)

    def _tail_formula(xt):
        xc = xt.astype(compute_dtype)
        mid = xc * slope + offset
        out = jnp.where(xc <= left, 0.0, jnp.where(xc >= right, 1.0, mid))
        return out.astype(orig_dtype)

    x_flat = jnp.reshape(x, (-1,))
    rows = n // _LANES
    n_main = rows * _LANES
    tail = n - n_main

    if rows == 0:
        # Fewer than 128 elements: a kernel launch is not worth it.
        return jnp.reshape(_tail_formula(x_flat), orig_shape)

    # 128-aligned prefix through the kernel (free reshape when tail == 0);
    # the <128-element tail is handled in plain jnp below.
    x_main = x_flat if tail == 0 else x_flat[:n_main]
    x2d = jnp.reshape(x_main, (rows, _LANES))

    sub = _sublane_multiple(orig_dtype)
    row_tile = _choose_row_tile(rows, sub, int(max_row_tile))
    grid = (_cdiv(rows, row_tile),)  # ragged last block handled by Pallas

    itemsize = jnp.dtype(orig_dtype).itemsize
    cost = pl.CostEstimate(flops=2 * n_main,
                           transcendentals=0,
                           bytes_accessed=2 * n_main * itemsize)

    out2d = pl.pallas_call(
        kernel,
        out_shape=jax.ShapeDtypeStruct((rows, _LANES), orig_dtype),
        grid=grid,
        in_specs=[pl.BlockSpec((row_tile, _LANES), lambda i: (i, 0))],
        out_specs=pl.BlockSpec((row_tile, _LANES), lambda i: (i, 0)),
        compiler_params=pltpu.CompilerParams(
            dimension_semantics=("parallel",),
            vmem_limit_bytes=32 * 1024 * 1024,
        ),
        cost_estimate=cost,
    )(x2d)

    out_flat = jnp.reshape(out2d, (-1,))
    if tail > 0:
        out_flat = jnp.concatenate([out_flat, _tail_formula(x_flat[n_main:])])
    return jnp.reshape(out_flat, orig_shape)


def _reference(x, slope=1.0 / 6.0, offset=0.5, left=-3.0, right=3.0):
    xf = x.astype(jnp.float32)
    out = jnp.where(xf <= left, 0.0,
                    jnp.where(xf >= right, 1.0, xf * slope + offset))
    return out.astype(x.dtype)


if __name__ == "__main__":
    key = jax.random.PRNGKey(0)

    # NCHW input, scaled so values span the [-3, 3] breakpoints. n = 2048
    # (multiple of 128) -> the zero-copy main path; grid has 2 blocks.
    x = jax.random.normal(key, (2, 4, 16, 16), dtype=jnp.float32) * 4.0
    out = jax.block_until_ready(hard_sigmoid(x))
    ref = _reference(x)
    assert out.shape == x.shape and out.dtype == x.dtype
    assert jnp.allclose(out, ref, atol=1e-6, rtol=1e-6), \
        "mismatch vs reference (clip path)"

    # Ragged size (n = 1155, not a multiple of 128) -> aligned prefix through
    # the kernel, 3-element tail through plain jnp.
    x2 = jax.random.normal(jax.random.PRNGKey(0), (3, 5, 7, 11),
                           dtype=jnp.float32) * 4.0
    out2 = jax.block_until_ready(hard_sigmoid(x2))
    assert jnp.allclose(out2, _reference(x2), atol=1e-6, rtol=1e-6), \
        "mismatch vs reference (ragged/tail path)"

    # Non-default breakpoints -> exercises the where-chain fallback kernel.
    out3 = jax.block_until_ready(
        hard_sigmoid(x, left_interval=-2.5, right_interval=2.5))
    ref3 = _reference(x, left=-2.5, right=2.5)
    assert jnp.allclose(out3, ref3, atol=1e-6, rtol=1e-6), \
        "mismatch vs reference (where fallback)"

    # bf16 input -> exercises the native-bf16 compute path (f32 on v5e).
    xb = x.astype(jnp.bfloat16)
    outb = jax.block_until_ready(hard_sigmoid(xb))
    refb = _reference(xb)
    assert outb.dtype == jnp.bfloat16
    assert jnp.allclose(outb.astype(jnp.float32), refb.astype(jnp.float32),
                        atol=2e-2, rtol=2e-2), "mismatch vs reference (bf16)"

    print("KERNEL_OK")
</pallas_src>

<mosaic_0001>
module attributes {stable_mosaic.version = 11 : i64} {
  func.func @_hard_sigmoid_clip_kernel(%arg0: i32, %arg1: memref<8x128xf32, #tpu.memory_space<vmem>>, %arg2: memref<8x128xf32, #tpu.memory_space<vmem>>) attributes {dimension_semantics = [#tpu.dimension_semantics<parallel>], iteration_bounds = array<i64: 2>, scalar_prefetch = 0 : i64, scratch_operands = 0 : i64, tpu.core_type = #tpu.core_type<tc>, window_params = [{transform_indices = @transform_0, window_bounds = array<i64: 8, 128>}, {transform_indices = @transform_1, window_bounds = array<i64: 8, 128>}]} {
    %c0 = arith.constant 0 : index
    %c0_0 = arith.constant 0 : index
    %0 = vector.load %arg1[%c0, %c0_0] : memref<8x128xf32, #tpu.memory_space<vmem>>, vector<8x128xf32>
    %cst = arith.constant 0.166666672 : f32
    %1 = vector.broadcast %cst : f32 to vector<8x128xf32>
    %2 = arith.mulf %0, %1 : vector<8x128xf32>
    %cst_1 = arith.constant 5.000000e-01 : f32
    %3 = vector.broadcast %cst_1 : f32 to vector<8x128xf32>
    %4 = arith.addf %2, %3 : vector<8x128xf32>
    %cst_2 = arith.constant 0.000000e+00 : f32
    %cst_3 = arith.constant 1.000000e+00 : f32
    %5 = vector.broadcast %cst_2 : f32 to vector<8x128xf32>
    %6 = arith.maximumf %5, %4 : vector<8x128xf32>
    %7 = vector.broadcast %cst_3 : f32 to vector<8x128xf32>
    %8 = arith.minimumf %7, %6 : vector<8x128xf32>
    %c0_4 = arith.constant 0 : index
    %c0_5 = arith.constant 0 : index
    %9 = vector.load %arg2[%c0_4, %c0_5] : memref<8x128xf32, #tpu.memory_space<vmem>>, vector<8x128xf32>
    tpu.vector_store %arg2[%c0_4, %c0_5], %8 {strides = array<i32>} : memref<8x128xf32, #tpu.memory_space<vmem>>, vector<8x128xf32>,
    return
  }
  func.func @transform_0(%arg0: i32) -> (i32, i32) {
    %c0_i32 = arith.constant 0 : i32
    %c0_i32_0 = arith.constant 0 : i32
    return %arg0, %c0_i32 : i32, i32
  }
  func.func @transform_1(%arg0: i32) -> (i32, i32) {
    %c0_i32 = arith.constant 0 : i32
    %c0_i32_0 = arith.constant 0 : i32
    return %arg0, %c0_i32 : i32, i32
  }
}

</mosaic_0001>

<bundles_post_ra>
// kernel: tpu_custom_call.1
= control target key start
LH: loop header
LB: loop body
LE: loop exit
PB: predicated region body
PF: predicated region fallthrough
CT: control target
= control target key end

     0   :  { %6 = vsyncpa [#allocation3], 0  ;;  %s519_s0 = inlined_call_operand.hbm [shape: f32[16,128], index: 0, kind: input, shape index: {}]   ;;  %s520_s1 = inlined_call_operand.hbm [shape: f32[16,128], index: 1, kind: output, shape index: {}]  }
   0x1   :  { %8 = vsyncpa [#allocation3 + $0x1], 0 }
   0x2   :  { %9 = vsyncpa [#allocation4], 0 }
   0x3   :  { %11 = vsyncpa [#allocation4 + $0x1], 0  ;;  %s392_s6 = smov 0   ;;  %s394_s7 = smov 0  }
   0x4   :  { %s396_s8 = smov 0   ;;  %s398_s9 = smov 0  }
   0x5 LB: > { %s413_s10 = sadd.s32 4294967295, %s380_s9   ;;  %s226_s11 = sadd.s32 4294967294, %s380_s9   ;;  %s380_s9 = sphi %s398_s9, %s530_s9   ;;  %s376_s8 = sphi %s396_s8, %s529_s8   ;;  %s372_s7 = sphi %s394_s7, %s528_s7   ;;  %s368_s6 = sphi %s392_s6, %s527_s6  }
   0x6   : > { %s417_s12 = sadd.s32 1, %s380_s9   ;;  %s24_s13 = sadd.s32 1, %s376_s8 }
   0x7   : > { %s21_s14 = ssub.s32 %s380_s9, %s417_s12  ;;  %p31_p0 = scmp.ne.s32.totalorder %s376_s8, %s372_s7 }
   0x8   : > { %p22_p1 = scmp.eq.s32.totalorder %s21_s14, 0  ;;  %p32_p2 = scmp.eq.s32.totalorder %s380_s9, 0 }
   0x9   : > { %p37_p3 = scmp.ne.s32.totalorder %s372_s7, %s368_s6  ;;  %p38_p4 = scmp.eq.s32.totalorder %s413_s10, 0 }
   0xa   : > { %s429_s15 = scalar_select %p22_p1, %s376_s8, %s24_s13  }
   0xb   : > { %p431_p5 = por %p32_p2, %p31_p0  ;;  %p435_p6 = por %p38_p4, %p37_p3 }
   0xc   : > { %p61_p7 = scmp.eq.s32.totalorder %s413_s10, 1  ;;  %p67_p8 = scmp.eq.s32.totalorder %s226_s11, 1 }
   0xd   : > { %p250_p10 = scmp.lt.s32.totalorder %s380_s9, 2  ;;  %s87_s20 = sand.u32 1, %s376_s8  }
   0xe   : > { %p442_p11 = por %p61_p7, %p31_p0  ;;  %p446_p12 = por %p67_p8, %p37_p3 }
   0xf   : > { %s230_s21 = sshll.u32 %s380_s9, 3  ;;  %s229_s22 = sshll.u32 %s87_s20, 3 }
  0x10   : > { %s95_s25 = scalar_lea.hbm %s519_s0, %s230_s21  ;;  %s91_s27 = scalar_lea.vmem [#allocation2], %s229_s22 }
  0x11   : > { %s97_s26 = sshll.u32 %s95_s25, 4  ;;  %s99_s28 = sshll.u32 %s91_s27, 4  ;;  %s98_s26 = int_to_ptr.hbm [resolvable:$true] %s97_s26  ;;  %s100_s28 = int_to_ptr.vmem [resolvable:$true] %s99_s28 }
  0x12   : > { %p457_p13 = pnand %p250_p10, %p431_p5  ;;  %p231_p0 = scmp.ge.s32.totalorder %s380_s9, 1 }
  0x13   : > { %p104_p1 = scmp.lt.s32.totalorder %s380_s9, 3  ;;  %s88_s30 = scalar_lea.sflag [#allocation3], %s87_s20 }
  0x14   : > { %s284_s2 = sshra.s32 %s98_s26, 4  ;;  %p288_p3 = pneg %p457_p13  ;;  %s285_s2 = int_to_ptr.hbm [resolvable:$true] %s284_s2 }
  0x15   : > { %s286_s3 = scalar_lea.hbm %s285_s2, 8  ;;  %s291_s11 = scalar_lea.hbm %s519_s0, 16 }
  0x16   : > { %p287_p2 = scmp.ne.s32.totalorder %s285_s2, %s286_s3  ;;  %p292_p5 = scmp.lt.s32.totalorder %s285_s2, %s519_s0 }
  0x17   : > { %p293_p8 = scmp.lt.s32.totalorder %s291_s11, %s286_s3 }
  0x18   : > { %p289_p4 = pnand %p288_p3, %p287_p2 }
  0x19   : > { %p294_p10 = por %p293_p8, %p292_p5 }
  0x1a   : > { %p290_p7 = pneg %p289_p4 }
  0x1c   : > { %p295_p9 = pnand %p294_p10, %p290_p7 }
  0x1e   : > { %298 = shalt.err (!%p295_p9)
}
  0x1f   : > { %245 = dma.hbm_to_vmem [thread:$0]  (!%p457_p13), %s98_s26, 128, %s100_s28, %s88_s30  }
  0x20   : > { %p105_p2 = pnand %p231_p0, %p104_p1 }
  0x21   : > { %s478_s16 = sand.u32 (!%p105_p2), 1, %s372_s7  }
  0x22   : > { %108 = sbr.rel (%p105_p2) target bundleno = 55 (0x37), region = 24  ;;  %s232_s20 = sshll.u32 (!%p105_p2), %s478_s16, 3 }
  0x23   : > { %s111_s21 = scalar_lea.sflag (!%p105_p2), [#allocation3], %s478_s16  ;;  %s114_s22 = scalar_lea.vmem (!%p105_p2), [#allocation2], %s232_s20 }
  0x27   : > { %359 = dma.done.wait (%p435_p6), %s111_s21, 128  }
  0x28   : > { %361 = vsyncadd (%p435_p6), %s111_s21, 4294967168  ;;  %s235_s23 = sshll.u32 %s413_s10, 3  ;;  %v134_v0 = vld [vmem:[%s114_s22] sm:$0xff]  ;;  %s133_s27 = scalar_lea.vmem [#allocation5], %s232_s20 }
  0x29   : > { %v135_v1 = vmul.f32 0.16666667, %v134_v0  ;;  %s151_s26 = scalar_lea.hbm %s520_s1, %s235_s23  ;;  %s153_s28 = sshll.u32 %s133_s27, 4  ;;  %s154_s28 = int_to_ptr.vmem [resolvable:$true] %s153_s28 }
  0x2a   : > { %s155_s29 = sshll.u32 %s151_s26, 4  ;;  %s141_s17 = scalar_lea.sflag [#allocation4], %s478_s16  ;;  %s156_s29 = int_to_ptr.hbm [resolvable:$true] %s155_s29 }
  0x2b   : > { %v136_v2 = vadd.f32 0.5, %v135_v1  ;;  %s328_s30 = sshra.s32 %s156_s29, 4  ;;  %s334_s4 = scalar_lea.hbm %s520_s1, 16  ;;  %s329_s30 = int_to_ptr.hbm [resolvable:$true] %s328_s30 }
  0x2c   : > { %s330_s10 = scalar_lea.hbm %s329_s30, 8  ;;  %p335_p0 = scmp.lt.s32.totalorder %s329_s30, %s520_s1 }
  0x2d   : > { %v137_v3 = vmax.f32 %v136_v2, 0.0  ;;  %p331_p6 = scmp.ne.s32.totalorder %s329_s30, %s330_s10  ;;  %p336_p1 = scmp.lt.s32.totalorder %s334_s4, %s330_s10 }
  0x2f   : > { %v138_v4 = vmin.f32 %v137_v3, 1.0  ;;  %p332_p9 = pnand %p331_p6, %p442_p11  ;;  %p337_p3 = por %p336_p1, %p335_p0 }
  0x31   : > { %139 = vst [vmem:[%s133_s27] sm:$0xff] %v138_v4  ;;  %p333_p13 = pneg %p332_p9 }
  0x33   : > { %p338_p4 = pnand %p337_p3, %p333_p13 }
  0x35   : > { %341 = shalt.err (!%p338_p4)
}
  0x36   : > { %240 = dma.vmem_to_hbm [thread:$0]  (%p442_p11), %s154_s28, 128, %s156_s29, %s141_s17  }
  0x37 PF: > { %s167_s13 = sand.u32 1, %s368_s6   ;;  %p526_p7 = scmp.ge.s32.totalorder %s380_s9, 2 }
  0x38   : > { %s168_s14 = scalar_lea.sflag [#allocation4], %s167_s13 }
  0x39   : > { %p247_p5 = pnand %p526_p7, %p446_p12 }
  0x3b   : > { %p248_p8 = pneg %p247_p5 }
  0x3d   : > { %363 = dma.done.wait (%p248_p8), %s168_s14, 128  }
  0x3e   : > { %365 = vsyncadd (%p248_p8), %s168_s14, 4294967168  ;;  %p14_p10 = scmp.ge.s32.totalorder %s417_s12, 4   ;;  %s527_s6 = smov %s372_s7 }
  0x3f   : > { %s528_s7 = smov %s376_s8  ;;  %s529_s8 = smov %s429_s15 }
  0x40   : > { %s530_s9 = smov %s417_s12  ;;  %16 = sbr.rel (!%p14_p10) target bundleno = 5 (0x5), region = 69 }
  0x45   :  { %174 = vsyncpa [#allocation3], 1 }
  0x46   :  { %176 = vsyncpa [#allocation3 + $0x1], 1 }
  0x47   :  { %177 = vsyncpa [#allocation4], 1 }
  0x48   :  { %179 = vsyncpa [#allocation4 + $0x1], 1 }

</bundles_post_ra>
